<compile_context>
chip_gen: v6e
topology: v6e:2x2x1
jax: 0.10.0
libtpu: 0.0.40
codegen_flags: <defaults>
</compile_context>

<pallas_src>
import jax
import jax.numpy as jnp
from jax.experimental import pallas as pl
from jax.experimental.pallas import tpu as pltpu


def _std_kernel(logvar_ref, std_ref):
    # logvar_ref: (1, 1, Cd, hw_tile)   -- only the log_var half is DMA'd in
    # std_ref:    (1, Cd, hw_tile)
    lv = logvar_ref[0, 0].astype(jnp.float32)
    lv = jnp.clip(lv, -70.0, 70.0)
    std = jnp.exp(lv * 0.5)
    std = jnp.clip(std, -0.001, 10.0)  # min=-0.001 is a no-op after exp; kept for parity
    std_ref[0] = std.astype(std_ref.dtype)


def _pick_hw_tile(hw, cd, itemsize):
    """Largest lane-dense tile (multiple of 128) dividing hw, bounded so the
    double-buffered (input + output) tiles stay well under the v7x scoped-VMEM
    default (~32 MiB) with plenty of headroom."""
    if hw % 128 != 0:
        return hw  # full-extent block on the lane axis is always legal
    budget = 8 * 1024 * 1024                      # bytes for one in+out tile pair
    per_lane = max(1, 2 * cd * itemsize)          # bytes per lane column (in + out)
    cap = min(hw, 2048, max(128, budget // per_lane))
    tile = 128
    for t in range(128, cap + 1, 128):
        if hw % t == 0:
            tile = t
    return tile


def normal_likelihood_forward(logits, *, use_pallas=None):
    """logits: (N, C, H, W) with C even. Returns (mu, std), each (N, C//2, H, W)."""
    n, c, h, w = logits.shape
    assert c % 2 == 0, "channel dim must hold (mu, log_var) pairs"
    cd = c // 2
    hw = h * w

    # mu is an identity passthrough in the PyTorch module: keep it out of the
    # kernel entirely (plain slice, fuses with downstream XLA consumers).
    mu = logits[:, :cd]

    if use_pallas is None:
        # Tiny problems: the fused XLA clip/exp/clip chain beats pallas_call
        # launch + per-grid-step overhead. Keep Pallas for large C*H*W.
        use_pallas = (n * cd * hw) >= (1 << 16)

    if not use_pallas:
        log_var = jnp.clip(logits[:, cd:].astype(jnp.float32), -70.0, 70.0)
        std = jnp.clip(jnp.exp(log_var * 0.5), -0.001, 10.0)
        return mu, std.astype(logits.dtype)

    hw_tile = _pick_hw_tile(hw, cd, jnp.dtype(logits.dtype).itemsize)
    grid = (n, hw // hw_tile)

    # Free, contiguous reshape: (N, C, H, W) -> (N, 2, Cd, H*W).
    #   half 0 = mu (never touched by the kernel), half 1 = log_var.
    x = logits.reshape(n, 2, cd, hw)

    std = pl.pallas_call(
        _std_kernel,
        out_shape=jax.ShapeDtypeStruct((n, cd, hw), logits.dtype),
        grid_spec=pltpu.PrefetchScalarGridSpec(
            num_scalar_prefetch=0,
            grid=grid,
            in_specs=[
                # DMA only the log_var half: block index 1 on the split axis.
                pl.BlockSpec((1, 1, cd, hw_tile), lambda i, j: (i, 1, 0, j)),
            ],
            out_specs=pl.BlockSpec((1, cd, hw_tile), lambda i, j: (i, 0, j)),
        ),
        compiler_params=pltpu.CompilerParams(
            dimension_semantics=("parallel", "parallel"),
        ),
    )(x)

    return mu, std.reshape(n, cd, h, w)


def _reference(logits):
    cd = logits.shape[1] // 2
    mu = logits[:, :cd]
    log_var = jnp.clip(logits[:, cd:], -70.0, 70.0)
    std = jnp.clip(jnp.exp(log_var / 2.0), -0.001, 10.0)
    return mu, std


if __name__ == "__main__":
    # domain_size = 4  =>  params_size = 8 channels in logits (NCHW)
    key = jax.random.PRNGKey(0)
    logits = jax.random.normal(key, (2, 8, 16, 16), dtype=jnp.float32) * 5.0

    mu, std = normal_likelihood_forward(logits, use_pallas=True)
    jax.block_until_ready((mu, std))

    mu_ref, std_ref = _reference(logits)
    assert mu.shape == (2, 4, 16, 16) and std.shape == (2, 4, 16, 16)
    assert jnp.allclose(mu, mu_ref, atol=1e-6)
    assert jnp.allclose(std, std_ref, rtol=1e-6, atol=1e-6)

    # Larger spatial shape to exercise the lane-dense multi-step tiled grid.
    key2 = jax.random.PRNGKey(1)
    logits_big = jax.random.normal(key2, (2, 8, 64, 128), dtype=jnp.float32) * 5.0
    mu_b, std_b = normal_likelihood_forward(logits_big, use_pallas=True)
    jax.block_until_ready((mu_b, std_b))
    mu_bref, std_bref = _reference(logits_big)
    assert jnp.allclose(mu_b, mu_bref, atol=1e-6)
    assert jnp.allclose(std_b, std_bref, rtol=1e-6, atol=1e-6)

    print("KERNEL_OK")
</pallas_src>

<mosaic_0001>
module attributes {stable_mosaic.version = 11 : i64} {
  func.func @_std_kernel(%arg0: i32, %arg1: i32, %arg2: memref<1x1x4x256xf32, #tpu.memory_space<vmem>>, %arg3: memref<1x4x256xf32, #tpu.memory_space<vmem>>) attributes {dimension_semantics = [#tpu.dimension_semantics<parallel>, #tpu.dimension_semantics<parallel>], iteration_bounds = array<i64: 2, 1>, scalar_prefetch = 0 : i64, scratch_operands = 0 : i64, tpu.core_type = #tpu.core_type<tc>, window_params = [{transform_indices = @transform_0, window_bounds = array<i64: 1, 1, 4, 256>}, {transform_indices = @transform_1, window_bounds = array<i64: 1, 4, 256>}]} {
    %c0 = arith.constant 0 : index
    %c0_0 = arith.constant 0 : index
    %c0_1 = arith.constant 0 : index
    %c0_2 = arith.constant 0 : index
    %0 = vector.load %arg2[%c0, %c0_0, %c0_1, %c0_2] : memref<1x1x4x256xf32, #tpu.memory_space<vmem>>, vector<1x1x4x256xf32>
    %1 = vector.shape_cast %0 : vector<1x1x4x256xf32> to vector<4x256xf32>
    %cst = arith.constant -7.000000e+01 : f32
    %cst_3 = arith.constant 7.000000e+01 : f32
    %2 = vector.broadcast %cst : f32 to vector<4x256xf32>
    %3 = arith.maximumf %2, %1 : vector<4x256xf32>
    %4 = vector.broadcast %cst_3 : f32 to vector<4x256xf32>
    %5 = arith.minimumf %4, %3 : vector<4x256xf32>
    %cst_4 = arith.constant 5.000000e-01 : f32
    %6 = vector.broadcast %cst_4 : f32 to vector<4x256xf32>
    %7 = arith.mulf %5, %6 : vector<4x256xf32>
    %8 = math.exp %7 : vector<4x256xf32>
    %cst_5 = arith.constant -1.000000e-03 : f32
    %cst_6 = arith.constant 1.000000e+01 : f32
    %9 = vector.broadcast %cst_5 : f32 to vector<4x256xf32>
    %10 = arith.maximumf %9, %8 : vector<4x256xf32>
    %11 = vector.broadcast %cst_6 : f32 to vector<4x256xf32>
    %12 = arith.minimumf %11, %10 : vector<4x256xf32>
    %c0_7 = arith.constant 0 : index
    %c0_8 = arith.constant 0 : index
    %c0_9 = arith.constant 0 : index
    %13 = vector.load %arg3[%c0_7, %c0_8, %c0_9] : memref<1x4x256xf32, #tpu.memory_space<vmem>>, vector<1x4x256xf32>
    %14 = vector.shape_cast %13 : vector<1x4x256xf32> to vector<4x256xf32>
    %15 = vector.shape_cast %12 : vector<4x256xf32> to vector<1x4x256xf32>
    tpu.vector_store %arg3[%c0_7, %c0_8, %c0_9], %15 {strides = array<i32>} : memref<1x4x256xf32, #tpu.memory_space<vmem>>, vector<1x4x256xf32>,
    return
  }
  func.func @transform_0(%arg0: i32, %arg1: i32) -> (i32, i32, i32, i32) {
    %c1_i32 = arith.constant 1 : i32
    %c0_i32 = arith.constant 0 : i32
    %c0_i32_0 = arith.constant 0 : i32
    return %arg0, %c1_i32, %c0_i32, %arg1 : i32, i32, i32, i32
  }
  func.func @transform_1(%arg0: i32, %arg1: i32) -> (i32, i32, i32) {
    %c0_i32 = arith.constant 0 : i32
    %c0_i32_0 = arith.constant 0 : i32
    return %arg0, %c0_i32, %arg1 : i32, i32, i32
  }
}

</mosaic_0001>

<bundles_post_ra>
// kernel: tpu_custom_call.1
= control target key start
LH: loop header
LB: loop body
LE: loop exit
PB: predicated region body
PF: predicated region fallthrough
CT: control target
= control target key end

     0   :  { %6 = vsyncpa [#allocation3], 0  ;;  %s604_s0 = inlined_call_operand.hbm [shape: f32[2,2,4,256], index: 0, kind: input, shape index: {}]   ;;  %s605_s1 = inlined_call_operand.hbm [shape: f32[2,4,256], index: 1, kind: output, shape index: {}]  }
   0x1   :  { %8 = vsyncpa [#allocation3 + $0x1], 0 }
   0x2   :  { %9 = vsyncpa [#allocation4], 0 }
   0x3   :  { %11 = vsyncpa [#allocation4 + $0x1], 0  ;;  %s470_s6 = smov 0   ;;  %s472_s7 = smov 0  }
   0x4   :  { %s474_s8 = smov 0   ;;  %s476_s9 = smov 0  }
   0x5   :  { %s478_s10 = smov 0   ;;  %s480_s11 = smov 0  }
   0x6 LB: > { %s265_s12 = sadd.s32 4294967295, %s456_s11   ;;  %s266_s13 = sadd.s32 4294967294, %s456_s11   ;;  %s456_s11 = sphi %s480_s11, %s17_s11   ;;  %s452_s10 = sphi %s478_s10, %s617_s10   ;;  %s448_s9 = sphi %s476_s9, %s616_s9   ;;  %s444_s8 = sphi %s474_s8, %s615_s8   ;;  %s440_s7 = sphi %s472_s7, %s614_s7   ;;  %s436_s6 = sphi %s470_s6, %s613_s6  }
   0x7   : > { %s29_s14 = sadd.s32 1, %s452_s10  ;;  %s38_s15 = sadd.s32 1, %s444_s8 }
   0x8   : > { %p31_p0 = scmp.ge.s32.totalorder %s29_s14, 2  ;;  %p45_p1 = scmp.ne.s32.totalorder %s444_s8, %s440_s7 }
   0x9   : > { %p46_p2 = scmp.eq.s32.totalorder %s456_s11, 0  ;;  %p51_p3 = scmp.ne.s32.totalorder %s440_s7, %s436_s6 }
   0xa   : > { %s619_s14 = smov (%p31_p0, %s29_s14), 0  ;;  %p52_p5 = scmp.eq.s32.totalorder %s265_s12, 0 }
   0xb   : > { %p511_p4 = por %p46_p2, %p45_p1  ;;  %s33_s17 = ssub.s32 %s452_s10, %s619_s14 }
   0xc   : > { %p77_p6 = scmp.eq.s32.totalorder %s265_s12, 1  ;;  %p36_p7 = scmp.eq.s32.totalorder %s33_s17, 0 }
   0xd   : > { %p517_p8 = por %p52_p5, %p51_p3  ;;  %p83_p10 = scmp.eq.s32.totalorder %s266_s13, 1 }
   0xe   : > { %p521_p9 = por %p77_p6, %p45_p1  ;;  %p295_p13 = scmp.lt.s32.totalorder %s456_s11, 2 }
   0xf   : > { %s526_s20 = scalar_select %p36_p7, %s444_s8, %s38_s15  }
  0x10   : > { %p528_p11 = por %p83_p10, %p51_p3  ;;  %s103_s22 = sand.u32 1, %s444_s8  }
  0x11   : > { %s269_s23 = sshll.u32 %s103_s22, 3  ;;  %s281_s24 = sshll.u32 %s452_s10, 8 }
  0x12   : > { %s609_s21 = scalar_select %p528_p11, 1, 0 }
  0x13   : > { %s211_s27 = scalar_lea.hbm %s604_s0, %s281_s24  ;;  %s107_s28 = scalar_lea.vmem [#allocation2], %s269_s23 }
  0x14   : > { %s118_s29 = sshll.u32 %s107_s28, 4  ;;  %s212_s30 = scalar_lea.hbm %s211_s27, 128  ;;  %s119_s29 = int_to_ptr.vmem [resolvable:$true] %s118_s29 }
  0x15   : > { %p541_p0 = pnand %p295_p13, %p511_p4  ;;  %p272_p1 = scmp.ge.s32.totalorder %s456_s11, 1 }
  0x16   : > { %p123_p2 = scmp.lt.s32.totalorder %s456_s11, 3  ;;  %s104_s3 = scalar_lea.sflag [#allocation3], %s103_s22 }
  0x17   : > { %p349_p3 = pneg %p541_p0  ;;  %s360_s4 = scalar_lea.vmem %s119_s29, 128 }
  0x18   : > { %p361_p5 = scmp.ne.s32.totalorder %s119_s29, %s360_s4  ;;  %s458_s5 = smov [#allocation2]  }
  0x19   : > { %s365_s12 = sshll.u32 %s458_s5, 4  ;;  %s366_s12 = int_to_ptr.vmem [resolvable:$false] %s365_s12 }
  0x1a   : > { %p363_p6 = pnand %p361_p5, %p349_p3  ;;  %s367_s13 = scalar_lea.vmem %s366_s12, 256 }
  0x1b   : > { %p368_p10 = scmp.lt.s32.totalorder %s119_s29, %s366_s12  ;;  %p369_p12 = scmp.lt.s32.totalorder %s367_s13, %s360_s4 }
  0x1c   : > { %p364_p7 = pneg %p363_p6 }
  0x1d   : > { %p370_p4 = por %p369_p12, %p368_p10 }
  0x1f   : > { %p371_p13 = pnand %p370_p4, %p364_p7 }
  0x21   : > { %374 = shalt.err (!%p371_p13)
}
  0x22   : > { %290 = dma.hbm_to_vmem [thread:$0]  (!%p541_p0), %s212_s30, 128, %s119_s29, %s104_s3  }
  0x23   : > { %p124_p11 = pnand %p272_p1, %p123_p2 }
  0x24   : > { %s556_s15 = sand.u32 (!%p124_p11), 1, %s440_s7  }
  0x25   : > { %127 = sbr.rel (%p124_p11) target bundleno = 81 (0x51), region = 24  ;;  %s273_s16 = sshll.u32 (!%p124_p11), %s556_s15, 3 }
  0x26   : > { %s130_s17 = scalar_lea.sflag (!%p124_p11), [#allocation3], %s556_s15  ;;  %s133_s22 = scalar_lea.vmem (!%p124_p11), [#allocation2], %s273_s16 }
  0x2a   : > { %427 = dma.done.wait (%p517_p8), %s130_s17, 128  }
  0x2b   : > { %429 = vsyncadd (%p517_p8), %s130_s17, 4294967168  ;;  %v154_v0 = vld [vmem:[%s133_s22] sm:$0xff]  ;;  %s151_s23 = scalar_lea.vmem [#allocation5], %s273_s16  ;;  %s282_s25 = sshll.u32 %s448_s9, 7 }
  0x2c   : > { %v275_v1 = vclamps-f32 %v154_v0, 70.0  ;;  %s180_s24 = sshll.u32 %s151_s23, 4  ;;  %s178_s18 = scalar_lea.hbm %s605_s1, %s282_s25  ;;  %s181_s24 = int_to_ptr.vmem [resolvable:$true] %s180_s24 }
  0x2d   : > { %s164_s28 = scalar_lea.sflag [#allocation4], %s556_s15  ;;  %s376_s29 = scalar_lea.vmem %s181_s24, 128 }
  0x2e   : > { %v157_v2 = vmul.f32 0.5, %v275_v1  ;;  %p377_p8 = scmp.ne.s32.totalorder %s181_s24, %s376_s29  ;;  %s459_s30 = smov [#allocation5]  }
  0x2f   : > { %s380_s2 = sshll.u32 %s459_s30, 4  ;;  %s381_s2 = int_to_ptr.vmem [resolvable:$false] %s380_s2 }
  0x30   : > { %v158_v3 = vmul.f32 1.442695, %v157_v2  ;;  %p378_p11 = pnand %p377_p8, %p521_p9  ;;  %s382_s3 = scalar_lea.vmem %s381_s2, 256 }
  0x31   : > { %p383_p0 = scmp.lt.s32.totalorder %s181_s24, %s381_s2  ;;  %p384_p1 = scmp.lt.s32.totalorder %s382_s3, %s376_s29 }
  0x32   : > { %345 = vpow2.f32 %v158_v3  ;;  %p379_p12 = pneg %p378_p11 }
  0x33   : > { %p385_p2 = por %p384_p1, %p383_p0 }
  0x35   : > { %p386_p3 = pnand %p385_p2, %p379_p12 }
  0x3f   : > { %v346_v4 = vpop.eup %345 }
  0x40   : > { %v160_v5 = vmax.f32 %v346_v4, -0.001 }
  0x42   : > { %v161_v6 = vmin.f32 %v160_v5, 10.0 }
  0x44   : > { %162 = vst [vmem:[%s151_s23] sm:$0xff] %v161_v6 }
  0x45   : > { %389 = shalt.err (!%p386_p3)
}
  0x46   : > { %s390_s9 = scalar_lea.hbm %s178_s18, 128  ;;  %s394_s12 = scalar_lea.hbm %s605_s1, 256 }
  0x47   : > { %p391_p5 = scmp.ne.s32.totalorder %s178_s18, %s390_s9  ;;  %p395_p10 = scmp.lt.s32.totalorder %s178_s18, %s605_s1 }
  0x48   : > { %p396_p4 = scmp.lt.s32.totalorder %s394_s12, %s390_s9 }
  0x49   : > { %p392_p6 = pnand %p391_p5, %p521_p9 }
  0x4a   : > { %p397_p13 = por %p396_p4, %p395_p10 }
  0x4b   : > { %p393_p7 = pneg %p392_p6 }
  0x4d   : > { %p398_p8 = pnand %p397_p13, %p393_p7 }
  0x4f   : > { %401 = shalt.err (!%p398_p8)
}
  0x50   : > { %285 = dma.vmem_to_hbm [thread:$0]  (%p521_p9), %s181_s24, 128, %s178_s18, %s164_s28  }
  0x51 PF: > { %s192_s16 = sand.u32 1, %s436_s6   ;;  %p611_p11 = scmp.ne.s32.totalorder %s609_s21, 0 }
  0x52   : > { %p612_p12 = scmp.ge.s32.totalorder %s456_s11, 2  ;;  %s193_s17 = scalar_lea.sflag [#allocation4], %s192_s16 }
  0x54   : > { %p292_p0 = pnand %p612_p12, %p611_p11 }
  0x56   : > { %p293_p1 = pneg %p292_p0 }
  0x58   : > { %431 = dma.done.wait (%p293_p1), %s193_s17, 128  }
  0x59   : > { %433 = vsyncadd (%p293_p1), %s193_s17, 4294967168  ;;  %s17_s11 = sadd.s32 1, %s456_s11   ;;  %s613_s6 = smov %s440_s7 }
  0x5a   : > { %p14_p2 = scmp.ge.s32.totalorder %s17_s11, 4   ;;  %s614_s7 = smov %s444_s8 }
  0x5b   : > { %s615_s8 = smov %s526_s20  ;;  %s616_s9 = smov %s452_s10 }
  0x5c   : > { %s617_s10 = smov %s619_s14  ;;  %16 = sbr.rel (!%p14_p2) target bundleno = 6 (0x6), region = 69 }
  0x61   :  { %198 = vsyncpa [#allocation3], 1 }
  0x62   :  { %200 = vsyncpa [#allocation3 + $0x1], 1 }
  0x63   :  { %201 = vsyncpa [#allocation4], 1 }
  0x64   :  { %203 = vsyncpa [#allocation4 + $0x1], 1 }

</bundles_post_ra>
